<compile_context>
chip_gen: v7x
topology: tpu7x:2x2x1
jax: 0.10.0
libtpu: 0.0.40
codegen_flags: <defaults>
</compile_context>

<pallas_src>
import jax
import jax.numpy as jnp
import numpy as np
from jax.experimental import pallas as pl
from jax.experimental.pallas import tpu as pltpu

EPS = 1e-12      # self.eps in the module
BN_EPS = 1e-5    # nn.BatchNorm1d default eps


def asp_kernel(x_ref, w1x_ref, w1ms_ref, b1_ref, w2_ref, b2_ref, out_ref):
    nb, C, L = x_ref.shape
    inv_L = 1.0 / L

    # Weights are block-invariant; load once per grid step.
    w1x = w1x_ref[...]      # (A, C)   acts on x            (BN scale pre-folded)
    w1ms = w1ms_ref[...]    # (A, 2C)  acts on [mean; std]  (BN scale pre-folded)
    b1 = b1_ref[...]        # (A, 1)
    w2 = w2_ref[...]        # (C, A)
    b2 = b2_ref[...]        # (C, 1)

    # Static unroll over the Nb batch slabs in this block (Nb is small).
    for b in range(nb):
        xs = x_ref[b].astype(jnp.float32)                       # (C, L)

        # ---- global-context stats, single pass (uniform weights 1/L) ----
        s1 = jnp.sum(xs, axis=1, keepdims=True)                 # (C, 1)
        s2 = jnp.sum(xs * xs, axis=1, keepdims=True)            # (C, 1)
        mean_g = s1 * inv_L
        std_g = jnp.sqrt(jnp.maximum(s2 * inv_L - mean_g * mean_g, EPS))

        # ---- TDNN block: Conv1d(3C->A, k=1) on concat([x, mean, std]) ----
        # mean/std are constant over L, so their contribution is one rank-1
        # matvec fused with the bias (instead of two lane-width-1 matmuls).
        ms = jnp.concatenate([mean_g, std_g], axis=0)            # (2C, 1)
        hb = b1 + jnp.dot(w1ms, ms, preferred_element_type=jnp.float32)   # (A, 1)
        h = jnp.dot(w1x, xs, preferred_element_type=jnp.float32) + hb     # (A, L)
        h = jnp.tanh(jnp.maximum(h, 0.0))    # ReLU -> (BN scale folded) -> tanh

        # ---- attention scores: Conv1d(A->C, k=1) ----
        e = jnp.dot(w2, h, preferred_element_type=jnp.float32) + b2       # (C, L)

        # ---- softmax over L with deferred normalization ----
        m = jnp.max(e, axis=1, keepdims=True)                    # (C, 1)
        p = jnp.exp(e - m)                                       # (C, L)
        den = jnp.sum(p, axis=1)                                 # (C,)
        px = p * xs
        s_px = jnp.sum(px, axis=1)                               # (C,)  sum p*x
        s_pxx = jnp.sum(px * xs, axis=1)                         # (C,)  sum p*x^2

        inv_den = 1.0 / den                                      # exact, only C elems
        mean_a = s_px * inv_den
        m2_a = s_pxx * inv_den
        std_a = jnp.sqrt(jnp.maximum(m2_a - mean_a * mean_a, EPS))

        # Lane-dense stores: C on the lane axis.
        out_ref[b, 0, :] = mean_a
        out_ref[b, 1, :] = std_a


def _pick_nb(N, C, L, itemsize, max_nb=8, max_slab_bytes=8 << 20):
    """Largest divisor of N that fits the VMEM budget and keeps >=2 grid steps."""
    best = 1
    for d in range(1, N + 1):
        if N % d:
            continue
        if d > max_nb:
            continue
        if d * C * L * itemsize > max_slab_bytes:
            continue
        if d > 1 and N // d < 2:
            continue   # keep both v7x TensorCores busy when batch allows
        best = d
    return best


def attentive_statistics_pooling(x, w1, b1, w2, b2):
    """x: [N, C, L] (f32 or bf16). w1: [A, 3C], b1: [A,1], w2: [C,A], b2: [C,1].
    Returns [N, 2*C, 1] f32 (concat of attentive mean and std per channel)."""
    N, C, L = x.shape
    A = w1.shape[0]
    assert w1.shape == (A, 3 * C) and b1.shape == (A, 1)
    assert w2.shape == (C, A) and b2.shape == (C, 1)

    # Fold the eval-mode BatchNorm scale into the first conv at trace time:
    # ReLU(h) * s == ReLU(s*h) for s > 0 (gamma=1, beta=0, running mean/var 0/1).
    bn_scale = 1.0 / np.sqrt(1.0 + BN_EPS)
    w1f = (w1 * bn_scale).astype(jnp.float32)
    b1f = (b1 * bn_scale).astype(jnp.float32)
    w1x = w1f[:, :C]          # (A, C)   acts on x
    w1ms = w1f[:, C:]         # (A, 2C)  acts on [mean; std]

    nb = _pick_nb(N, C, L, jnp.dtype(x.dtype).itemsize)
    grid = (N // nb,)

    # VMEM budgeting: double-buffered x block + live f32 intermediates + weights.
    x_block = 2 * nb * C * L * jnp.dtype(x.dtype).itemsize
    interm = nb * (4 * C * L + 3 * A * L) * 4
    wbytes = (A * 3 * C + A + C * A + C) * 4
    est = x_block + interm + wbytes + 2 * nb * 2 * C * 4
    vmem_limit = None
    if est > 16 * 1024 * 1024:
        vmem_limit = int(min(est * 1.25, 64 * 1024 * 1024))

    out = pl.pallas_call(
        asp_kernel,
        out_shape=jax.ShapeDtypeStruct((N, 2, C), jnp.float32),
        grid=grid,
        in_specs=[
            pl.BlockSpec((nb, C, L), lambda i: (i, 0, 0)),     # x, Nb batch slabs
            pl.BlockSpec((A, C), lambda i: (0, 0)),            # tdnn weight (x part)
            pl.BlockSpec((A, 2 * C), lambda i: (0, 0)),        # tdnn weight (mean/std)
            pl.BlockSpec((A, 1), lambda i: (0, 0)),            # tdnn bias
            pl.BlockSpec((C, A), lambda i: (0, 0)),            # attn conv weight
            pl.BlockSpec((C, 1), lambda i: (0, 0)),            # attn conv bias
        ],
        out_specs=pl.BlockSpec((nb, 2, C), lambda i: (i, 0, 0)),
        compiler_params=pltpu.CompilerParams(
            dimension_semantics=("parallel",),
            vmem_limit_bytes=vmem_limit,
        ),
    )(x, w1x, w1ms, b1f, w2, b2)

    # (N, 2, C) -> (N, 2C, 1): rows [0:C] = mean, [C:2C] = std (matches torch cat).
    return out.reshape(N, 2 * C, 1)


def reference_jax(x, w1, b1, w2, b2):
    """Pure-JAX reference of the same forward (lengths=None, unfolded BN)."""
    N, C, L = x.shape
    mean_g = jnp.sum(x, axis=2, keepdims=True) / L
    std_g = jnp.sqrt(jnp.maximum(jnp.sum((x - mean_g) ** 2, axis=2, keepdims=True) / L, EPS))
    attn_in = jnp.concatenate(
        [x, jnp.repeat(mean_g, L, axis=2), jnp.repeat(std_g, L, axis=2)], axis=1)   # (N, 3C, L)
    h = jnp.einsum("ac,ncl->nal", w1, attn_in) + b1[None]
    h = jnp.maximum(h, 0.0) / jnp.sqrt(1.0 + BN_EPS)
    h = jnp.tanh(h)
    e = jnp.einsum("ca,nal->ncl", w2, h) + b2[None]
    attn = jax.nn.softmax(e, axis=2)
    mean_a = jnp.sum(attn * x, axis=2)
    std_a = jnp.sqrt(jnp.maximum(jnp.sum(attn * (x - mean_a[..., None]) ** 2, axis=2), EPS))
    return jnp.concatenate([mean_a, std_a], axis=1)[..., None]


if __name__ == "__main__":
    # batch, channels, attention_channels, sequence length (small test shapes).
    N, C, A, L = 8, 8, 16, 32

    key = jax.random.PRNGKey(0)
    kx, k1, k2, k3, k4 = jax.random.split(key, 5)

    x = jax.random.normal(kx, (N, C, L), dtype=jnp.float32)

    # Deterministic synthetic parameters (kernel_size=1 convs -> dense matrices).
    w1 = jax.random.normal(k1, (A, 3 * C), dtype=jnp.float32) * 0.1   # tdnn conv weight
    b1 = jax.random.normal(k2, (A, 1), dtype=jnp.float32) * 0.1       # tdnn conv bias
    w2 = jax.random.normal(k3, (C, A), dtype=jnp.float32) * 0.1       # attn conv weight
    b2 = jax.random.normal(k4, (C, 1), dtype=jnp.float32) * 0.1       # attn conv bias

    out = attentive_statistics_pooling(x, w1, b1, w2, b2)
    out = jax.block_until_ready(out)

    ref = jax.block_until_ready(reference_jax(x, w1, b1, w2, b2))
    np.testing.assert_allclose(np.asarray(out), np.asarray(ref), rtol=1e-4, atol=1e-5)

    assert out.shape == (N, 2 * C, 1)
    print("KERNEL_OK")
</pallas_src>

<mosaic_0001>
module attributes {stable_mosaic.version = 11 : i64} {
  func.func @asp_kernel(%arg0: i32, %arg1: memref<4x8x32xf32, #tpu.memory_space<vmem>>, %arg2: memref<16x8xf32, #tpu.memory_space<vmem>>, %arg3: memref<16x16xf32, #tpu.memory_space<vmem>>, %arg4: memref<16x1xf32, #tpu.memory_space<vmem>>, %arg5: memref<8x16xf32, #tpu.memory_space<vmem>>, %arg6: memref<8x1xf32, #tpu.memory_space<vmem>>, %arg7: memref<4x2x8xf32, #tpu.memory_space<vmem>>) attributes {dimension_semantics = [#tpu.dimension_semantics<parallel>], iteration_bounds = array<i64: 2>, scalar_prefetch = 0 : i64, scratch_operands = 0 : i64, tpu.core_type = #tpu.core_type<tc>, window_params = [{transform_indices = @transform_0, window_bounds = array<i64: 4, 8, 32>}, {pipeline_mode = #tpu.pipeline_mode<synchronous>, transform_indices = @transform_1, window_bounds = array<i64: 16, 8>}, {pipeline_mode = #tpu.pipeline_mode<synchronous>, transform_indices = @transform_2, window_bounds = array<i64: 16, 16>}, {pipeline_mode = #tpu.pipeline_mode<synchronous>, transform_indices = @transform_3, window_bounds = array<i64: 16, 1>}, {pipeline_mode = #tpu.pipeline_mode<synchronous>, transform_indices = @transform_4, window_bounds = array<i64: 8, 16>}, {pipeline_mode = #tpu.pipeline_mode<synchronous>, transform_indices = @transform_5, window_bounds = array<i64: 8, 1>}, {transform_indices = @transform_6, window_bounds = array<i64: 4, 2, 8>}]} {
    %c0 = arith.constant 0 : index
    %c0_0 = arith.constant 0 : index
    %0 = vector.load %arg2[%c0, %c0_0] : memref<16x8xf32, #tpu.memory_space<vmem>>, vector<16x8xf32>
    %c0_1 = arith.constant 0 : index
    %c0_2 = arith.constant 0 : index
    %1 = vector.load %arg3[%c0_1, %c0_2] : memref<16x16xf32, #tpu.memory_space<vmem>>, vector<16x16xf32>
    %c0_3 = arith.constant 0 : index
    %c0_4 = arith.constant 0 : index
    %2 = vector.load %arg4[%c0_3, %c0_4] : memref<16x1xf32, #tpu.memory_space<vmem>>, vector<16x1xf32>
    %c0_5 = arith.constant 0 : index
    %c0_6 = arith.constant 0 : index
    %3 = vector.load %arg5[%c0_5, %c0_6] : memref<8x16xf32, #tpu.memory_space<vmem>>, vector<8x16xf32>
    %c0_7 = arith.constant 0 : index
    %c0_8 = arith.constant 0 : index
    %4 = vector.load %arg6[%c0_7, %c0_8] : memref<8x1xf32, #tpu.memory_space<vmem>>, vector<8x1xf32>
    %c0_9 = arith.constant 0 : index
    %c0_10 = arith.constant 0 : index
    %c0_11 = arith.constant 0 : index
    %5 = vector.load %arg1[%c0_9, %c0_10, %c0_11] : memref<4x8x32xf32, #tpu.memory_space<vmem>>, vector<1x8x32xf32>
    %6 = vector.shape_cast %5 : vector<1x8x32xf32> to vector<8x32xf32>
    %cst = arith.constant dense<0.000000e+00> : vector<8xf32>
    %7 = vector.multi_reduction <add>, %6, %cst [1] : vector<8x32xf32> to vector<8xf32>
    %8 = vector.shape_cast %7 : vector<8xf32> to vector<8x1xf32>
    %9 = arith.mulf %6, %6 : vector<8x32xf32>
    %cst_12 = arith.constant dense<0.000000e+00> : vector<8xf32>
    %10 = vector.multi_reduction <add>, %9, %cst_12 [1] : vector<8x32xf32> to vector<8xf32>
    %11 = vector.shape_cast %10 : vector<8xf32> to vector<8x1xf32>
    %cst_13 = arith.constant 3.125000e-02 : f32
    %12 = vector.broadcast %cst_13 : f32 to vector<8x1xf32>
    %13 = arith.mulf %8, %12 : vector<8x1xf32>
    %cst_14 = arith.constant 3.125000e-02 : f32
    %14 = vector.broadcast %cst_14 : f32 to vector<8x1xf32>
    %15 = arith.mulf %11, %14 : vector<8x1xf32>
    %16 = arith.mulf %13, %13 : vector<8x1xf32>
    %17 = arith.subf %15, %16 : vector<8x1xf32>
    %cst_15 = arith.constant 9.99999996E-13 : f32
    %18 = vector.broadcast %cst_15 : f32 to vector<8x1xf32>
    %19 = arith.maximumf %17, %18 : vector<8x1xf32>
    %20 = math.sqrt %19 : vector<8x1xf32>
    %21 = tpu.concatenate %13, %20 in 0 : vector<8x1xf32>, vector<8x1xf32> -> vector<16x1xf32>
    %cst_16 = arith.constant dense<0.000000e+00> : vector<16x1xf32>
    %22 = tpu.matmul %1, %21, %cst_16 {dimension_numbers = #tpu.dot_dimension_numbers<[1], [0], [0], [1], [0, 0, 1, 1], [], []>} : vector<16x16xf32>, vector<16x1xf32>, vector<16x1xf32> -> vector<16x1xf32>
    %23 = arith.addf %2, %22 : vector<16x1xf32>
    %cst_17 = arith.constant dense<0.000000e+00> : vector<16x32xf32>
    %24 = tpu.matmul %0, %6, %cst_17 {dimension_numbers = #tpu.dot_dimension_numbers<[1], [0], [0], [1], [0, 0, 1, 1], [], []>} : vector<16x8xf32>, vector<8x32xf32>, vector<16x32xf32> -> vector<16x32xf32>
    %25 = vector.broadcast %23 : vector<16x1xf32> to vector<16x32xf32>
    %26 = arith.addf %24, %25 : vector<16x32xf32>
    %cst_18 = arith.constant 0.000000e+00 : f32
    %27 = vector.broadcast %cst_18 : f32 to vector<16x32xf32>
    %28 = arith.maximumf %26, %27 : vector<16x32xf32>
    %29 = math.tanh %28 : vector<16x32xf32>
    %cst_19 = arith.constant dense<0.000000e+00> : vector<8x32xf32>
    %30 = tpu.matmul %3, %29, %cst_19 {dimension_numbers = #tpu.dot_dimension_numbers<[1], [0], [0], [1], [0, 0, 1, 1], [], []>} : vector<8x16xf32>, vector<16x32xf32>, vector<8x32xf32> -> vector<8x32xf32>
    %31 = vector.broadcast %4 : vector<8x1xf32> to vector<8x32xf32>
    %32 = arith.addf %30, %31 : vector<8x32xf32>
    %cst_20 = arith.constant dense<0xFF800000> : vector<8xf32>
    %33 = vector.multi_reduction <maximumf>, %32, %cst_20 [1] : vector<8x32xf32> to vector<8xf32>
    %34 = vector.shape_cast %33 : vector<8xf32> to vector<8x1xf32>
    %35 = vector.broadcast %34 : vector<8x1xf32> to vector<8x32xf32>
    %36 = arith.subf %32, %35 : vector<8x32xf32>
    %37 = math.exp %36 : vector<8x32xf32>
    %cst_21 = arith.constant dense<0.000000e+00> : vector<8xf32>
    %38 = vector.multi_reduction <add>, %37, %cst_21 [1] : vector<8x32xf32> to vector<8xf32>
    %39 = arith.mulf %37, %6 : vector<8x32xf32>
    %cst_22 = arith.constant dense<0.000000e+00> : vector<8xf32>
    %40 = vector.multi_reduction <add>, %39, %cst_22 [1] : vector<8x32xf32> to vector<8xf32>
    %41 = arith.mulf %39, %6 : vector<8x32xf32>
    %cst_23 = arith.constant dense<0.000000e+00> : vector<8xf32>
    %42 = vector.multi_reduction <add>, %41, %cst_23 [1] : vector<8x32xf32> to vector<8xf32>
    %cst_24 = arith.constant 1.000000e+00 : f32
    %43 = vector.broadcast %cst_24 : f32 to vector<8xf32>
    %44 = arith.divf %43, %38 : vector<8xf32>
    %45 = arith.mulf %40, %44 : vector<8xf32>
    %46 = arith.mulf %42, %44 : vector<8xf32>
    %47 = arith.mulf %45, %45 : vector<8xf32>
    %48 = arith.subf %46, %47 : vector<8xf32>
    %cst_25 = arith.constant 9.99999996E-13 : f32
    %49 = vector.broadcast %cst_25 : f32 to vector<8xf32>
    %50 = arith.maximumf %48, %49 : vector<8xf32>
    %51 = math.sqrt %50 : vector<8xf32>
    %c0_26 = arith.constant 0 : index
    %c0_27 = arith.constant 0 : index
    %c0_28 = arith.constant 0 : index
    %52 = vector.load %arg7[%c0_26, %c0_27, %c0_28] : memref<4x2x8xf32, #tpu.memory_space<vmem>>, vector<1x1x8xf32>
    %53 = vector.shape_cast %52 : vector<1x1x8xf32> to vector<8xf32>
    %54 = vector.shape_cast %45 : vector<8xf32> to vector<1x1x8xf32>
    tpu.vector_store %arg7[%c0_26, %c0_27, %c0_28], %54 {strides = array<i32>} : memref<4x2x8xf32, #tpu.memory_space<vmem>>, vector<1x1x8xf32>,
    %c0_29 = arith.constant 0 : index
    %c1 = arith.constant 1 : index
    %c0_30 = arith.constant 0 : index
    %55 = vector.load %arg7[%c0_29, %c1, %c0_30] : memref<4x2x8xf32, #tpu.memory_space<vmem>>, vector<1x1x8xf32>
    %56 = vector.shape_cast %55 : vector<1x1x8xf32> to vector<8xf32>
    %57 = vector.shape_cast %51 : vector<8xf32> to vector<1x1x8xf32>
    tpu.vector_store %arg7[%c0_29, %c1, %c0_30], %57 {strides = array<i32>} : memref<4x2x8xf32, #tpu.memory_space<vmem>>, vector<1x1x8xf32>,
    %c1_31 = arith.constant 1 : index
    %c0_32 = arith.constant 0 : index
    %c0_33 = arith.constant 0 : index
    %58 = vector.load %arg1[%c1_31, %c0_32, %c0_33] : memref<4x8x32xf32, #tpu.memory_space<vmem>>, vector<1x8x32xf32>
    %59 = vector.shape_cast %58 : vector<1x8x32xf32> to vector<8x32xf32>
    %cst_34 = arith.constant dense<0.000000e+00> : vector<8xf32>
    %60 = vector.multi_reduction <add>, %59, %cst_34 [1] : vector<8x32xf32> to vector<8xf32>
    %61 = vector.shape_cast %60 : vector<8xf32> to vector<8x1xf32>
    %62 = arith.mulf %59, %59 : vector<8x32xf32>
    %cst_35 = arith.constant dense<0.000000e+00> : vector<8xf32>
    %63 = vector.multi_reduction <add>, %62, %cst_35 [1] : vector<8x32xf32> to vector<8xf32>
    %64 = vector.shape_cast %63 : vector<8xf32> to vector<8x1xf32>
    %cst_36 = arith.constant 3.125000e-02 : f32
    %65 = vector.broadcast %cst_36 : f32 to vector<8x1xf32>
    %66 = arith.mulf %61, %65 : vector<8x1xf32>
    %cst_37 = arith.constant 3.125000e-02 : f32
    %67 = vector.broadcast %cst_37 : f32 to vector<8x1xf32>
    %68 = arith.mulf %64, %67 : vector<8x1xf32>
    %69 = arith.mulf %66, %66 : vector<8x1xf32>
    %70 = arith.subf %68, %69 : vector<8x1xf32>
    %cst_38 = arith.constant 9.99999996E-13 : f32
    %71 = vector.broadcast %cst_38 : f32 to vector<8x1xf32>
    %72 = arith.maximumf %70, %71 : vector<8x1xf32>
    %73 = math.sqrt %72 : vector<8x1xf32>
    %74 = tpu.concatenate %66, %73 in 0 : vector<8x1xf32>, vector<8x1xf32> -> vector<16x1xf32>
    %cst_39 = arith.constant dense<0.000000e+00> : vector<16x1xf32>
    %75 = tpu.matmul %1, %74, %cst_39 {dimension_numbers = #tpu.dot_dimension_numbers<[1], [0], [0], [1], [0, 0, 1, 1], [], []>} : vector<16x16xf32>, vector<16x1xf32>, vector<16x1xf32> -> vector<16x1xf32>
    %76 = arith.addf %2, %75 : vector<16x1xf32>
    %cst_40 = arith.constant dense<0.000000e+00> : vector<16x32xf32>
    %77 = tpu.matmul %0, %59, %cst_40 {dimension_numbers = #tpu.dot_dimension_numbers<[1], [0], [0], [1], [0, 0, 1, 1], [], []>} : vector<16x8xf32>, vector<8x32xf32>, vector<16x32xf32> -> vector<16x32xf32>
    %78 = vector.broadcast %76 : vector<16x1xf32> to vector<16x32xf32>
    %79 = arith.addf %77, %78 : vector<16x32xf32>
    %cst_41 = arith.constant 0.000000e+00 : f32
    %80 = vector.broadcast %cst_41 : f32 to vector<16x32xf32>
    %81 = arith.maximumf %79, %80 : vector<16x32xf32>
    %82 = math.tanh %81 : vector<16x32xf32>
    %cst_42 = arith.constant dense<0.000000e+00> : vector<8x32xf32>
    %83 = tpu.matmul %3, %82, %cst_42 {dimension_numbers = #tpu.dot_dimension_numbers<[1], [0], [0], [1], [0, 0, 1, 1], [], []>} : vector<8x16xf32>, vector<16x32xf32>, vector<8x32xf32> -> vector<8x32xf32>
    %84 = vector.broadcast %4 : vector<8x1xf32> to vector<8x32xf32>
    %85 = arith.addf %83, %84 : vector<8x32xf32>
    %cst_43 = arith.constant dense<0xFF800000> : vector<8xf32>
    %86 = vector.multi_reduction <maximumf>, %85, %cst_43 [1] : vector<8x32xf32> to vector<8xf32>
    %87 = vector.shape_cast %86 : vector<8xf32> to vector<8x1xf32>
    %88 = vector.broadcast %87 : vector<8x1xf32> to vector<8x32xf32>
    %89 = arith.subf %85, %88 : vector<8x32xf32>
    %90 = math.exp %89 : vector<8x32xf32>
    %cst_44 = arith.constant dense<0.000000e+00> : vector<8xf32>
    %91 = vector.multi_reduction <add>, %90, %cst_44 [1] : vector<8x32xf32> to vector<8xf32>
    %92 = arith.mulf %90, %59 : vector<8x32xf32>
    %cst_45 = arith.constant dense<0.000000e+00> : vector<8xf32>
    %93 = vector.multi_reduction <add>, %92, %cst_45 [1] : vector<8x32xf32> to vector<8xf32>
    %94 = arith.mulf %92, %59 : vector<8x32xf32>
    %cst_46 = arith.constant dense<0.000000e+00> : vector<8xf32>
    %95 = vector.multi_reduction <add>, %94, %cst_46 [1] : vector<8x32xf32> to vector<8xf32>
    %cst_47 = arith.constant 1.000000e+00 : f32
    %96 = vector.broadcast %cst_47 : f32 to vector<8xf32>
    %97 = arith.divf %96, %91 : vector<8xf32>
    %98 = arith.mulf %93, %97 : vector<8xf32>
    %99 = arith.mulf %95, %97 : vector<8xf32>
    %100 = arith.mulf %98, %98 : vector<8xf32>
    %101 = arith.subf %99, %100 : vector<8xf32>
    %cst_48 = arith.constant 9.99999996E-13 : f32
    %102 = vector.broadcast %cst_48 : f32 to vector<8xf32>
    %103 = arith.maximumf %101, %102 : vector<8xf32>
    %104 = math.sqrt %103 : vector<8xf32>
    %c1_49 = arith.constant 1 : index
    %c0_50 = arith.constant 0 : index
    %c0_51 = arith.constant 0 : index
    %105 = vector.load %arg7[%c1_49, %c0_50, %c0_51] : memref<4x2x8xf32, #tpu.memory_space<vmem>>, vector<1x1x8xf32>
    %106 = vector.shape_cast %105 : vector<1x1x8xf32> to vector<8xf32>
    %107 = vector.shape_cast %98 : vector<8xf32> to vector<1x1x8xf32>
    tpu.vector_store %arg7[%c1_49, %c0_50, %c0_51], %107 {strides = array<i32>} : memref<4x2x8xf32, #tpu.memory_space<vmem>>, vector<1x1x8xf32>,
    %c1_52 = arith.constant 1 : index
    %c1_53 = arith.constant 1 : index
    %c0_54 = arith.constant 0 : index
    %108 = vector.load %arg7[%c1_52, %c1_53, %c0_54] : memref<4x2x8xf32, #tpu.memory_space<vmem>>, vector<1x1x8xf32>
    %109 = vector.shape_cast %108 : vector<1x1x8xf32> to vector<8xf32>
    %110 = vector.shape_cast %104 : vector<8xf32> to vector<1x1x8xf32>
    tpu.vector_store %arg7[%c1_52, %c1_53, %c0_54], %110 {strides = array<i32>} : memref<4x2x8xf32, #tpu.memory_space<vmem>>, vector<1x1x8xf32>,
    %c2 = arith.constant 2 : index
    %c0_55 = arith.constant 0 : index
    %c0_56 = arith.constant 0 : index
    %111 = vector.load %arg1[%c2, %c0_55, %c0_56] : memref<4x8x32xf32, #tpu.memory_space<vmem>>, vector<1x8x32xf32>
    %112 = vector.shape_cast %111 : vector<1x8x32xf32> to vector<8x32xf32>
    %cst_57 = arith.constant dense<0.000000e+00> : vector<8xf32>
    %113 = vector.multi_reduction <add>, %112, %cst_57 [1] : vector<8x32xf32> to vector<8xf32>
    %114 = vector.shape_cast %113 : vector<8xf32> to vector<8x1xf32>
    %115 = arith.mulf %112, %112 : vector<8x32xf32>
    %cst_58 = arith.constant dense<0.000000e+00> : vector<8xf32>
    %116 = vector.multi_reduction <add>, %115, %cst_58 [1] : vector<8x32xf32> to vector<8xf32>
    %117 = vector.shape_cast %116 : vector<8xf32> to vector<8x1xf32>
    %cst_59 = arith.constant 3.125000e-02 : f32
    %118 = vector.broadcast %cst_59 : f32 to vector<8x1xf32>
    %119 = arith.mulf %114, %118 : vector<8x1xf32>
    %cst_60 = arith.constant 3.125000e-02 : f32
    %120 = vector.broadcast %cst_60 : f32 to vector<8x1xf32>
    %121 = arith.mulf %117, %120 : vector<8x1xf32>
    %122 = arith.mulf %119, %119 : vector<8x1xf32>
    %123 = arith.subf %121, %122 : vector<8x1xf32>
    %cst_61 = arith.constant 9.99999996E-13 : f32
    %124 = vector.broadcast %cst_61 : f32 to vector<8x1xf32>
    %125 = arith.maximumf %123, %124 : vector<8x1xf32>
    %126 = math.sqrt %125 : vector<8x1xf32>
    %127 = tpu.concatenate %119, %126 in 0 : vector<8x1xf32>, vector<8x1xf32> -> vector<16x1xf32>
    %cst_62 = arith.constant dense<0.000000e+00> : vector<16x1xf32>
    %128 = tpu.matmul %1, %127, %cst_62 {dimension_numbers = #tpu.dot_dimension_numbers<[1], [0], [0], [1], [0, 0, 1, 1], [], []>} : vector<16x16xf32>, vector<16x1xf32>, vector<16x1xf32> -> vector<16x1xf32>
    %129 = arith.addf %2, %128 : vector<16x1xf32>
    %cst_63 = arith.constant dense<0.000000e+00> : vector<16x32xf32>
    %130 = tpu.matmul %0, %112, %cst_63 {dimension_numbers = #tpu.dot_dimension_numbers<[1], [0], [0], [1], [0, 0, 1, 1], [], []>} : vector<16x8xf32>, vector<8x32xf32>, vector<16x32xf32> -> vector<16x32xf32>
    %131 = vector.broadcast %129 : vector<16x1xf32> to vector<16x32xf32>
    %132 = arith.addf %130, %131 : vector<16x32xf32>
    %cst_64 = arith.constant 0.000000e+00 : f32
    %133 = vector.broadcast %cst_64 : f32 to vector<16x32xf32>
    %134 = arith.maximumf %132, %133 : vector<16x32xf32>
    %135 = math.tanh %134 : vector<16x32xf32>
    %cst_65 = arith.constant dense<0.000000e+00> : vector<8x32xf32>
    %136 = tpu.matmul %3, %135, %cst_65 {dimension_numbers = #tpu.dot_dimension_numbers<[1], [0], [0], [1], [0, 0, 1, 1], [], []>} : vector<8x16xf32>, vector<16x32xf32>, vector<8x32xf32> -> vector<8x32xf32>
    %137 = vector.broadcast %4 : vector<8x1xf32> to vector<8x32xf32>
    %138 = arith.addf %136, %137 : vector<8x32xf32>
    %cst_66 = arith.constant dense<0xFF800000> : vector<8xf32>
    %139 = vector.multi_reduction <maximumf>, %138, %cst_66 [1] : vector<8x32xf32> to vector<8xf32>
    %140 = vector.shape_cast %139 : vector<8xf32> to vector<8x1xf32>
    %141 = vector.broadcast %140 : vector<8x1xf32> to vector<8x32xf32>
    %142 = arith.subf %138, %141 : vector<8x32xf32>
    %143 = math.exp %142 : vector<8x32xf32>
    %cst_67 = arith.constant dense<0.000000e+00> : vector<8xf32>
    %144 = vector.multi_reduction <add>, %143, %cst_67 [1] : vector<8x32xf32> to vector<8xf32>
    %145 = arith.mulf %143, %112 : vector<8x32xf32>
    %cst_68 = arith.constant dense<0.000000e+00> : vector<8xf32>
    %146 = vector.multi_reduction <add>, %145, %cst_68 [1] : vector<8x32xf32> to vector<8xf32>
    %147 = arith.mulf %145, %112 : vector<8x32xf32>
    %cst_69 = arith.constant dense<0.000000e+00> : vector<8xf32>
    %148 = vector.multi_reduction <add>, %147, %cst_69 [1] : vector<8x32xf32> to vector<8xf32>
    %cst_70 = arith.constant 1.000000e+00 : f32
    %149 = vector.broadcast %cst_70 : f32 to vector<8xf32>
    %150 = arith.divf %149, %144 : vector<8xf32>
    %151 = arith.mulf %146, %150 : vector<8xf32>
    %152 = arith.mulf %148, %150 : vector<8xf32>
    %153 = arith.mulf %151, %151 : vector<8xf32>
    %154 = arith.subf %152, %153 : vector<8xf32>
    %cst_71 = arith.constant 9.99999996E-13 : f32
    %155 = vector.broadcast %cst_71 : f32 to vector<8xf32>
    %156 = arith.maximumf %154, %155 : vector<8xf32>
    %157 = math.sqrt %156 : vector<8xf32>
    %c2_72 = arith.constant 2 : index
    %c0_73 = arith.constant 0 : index
    %c0_74 = arith.constant 0 : index
    %158 = vector.load %arg7[%c2_72, %c0_73, %c0_74] : memref<4x2x8xf32, #tpu.memory_space<vmem>>, vector<1x1x8xf32>
    %159 = vector.shape_cast %158 : vector<1x1x8xf32> to vector<8xf32>
    %160 = vector.shape_cast %151 : vector<8xf32> to vector<1x1x8xf32>
    tpu.vector_store %arg7[%c2_72, %c0_73, %c0_74], %160 {strides = array<i32>} : memref<4x2x8xf32, #tpu.memory_space<vmem>>, vector<1x1x8xf32>,
    %c2_75 = arith.constant 2 : index
    %c1_76 = arith.constant 1 : index
    %c0_77 = arith.constant 0 : index
    %161 = vector.load %arg7[%c2_75, %c1_76, %c0_77] : memref<4x2x8xf32, #tpu.memory_space<vmem>>, vector<1x1x8xf32>
    %162 = vector.shape_cast %161 : vector<1x1x8xf32> to vector<8xf32>
    %163 = vector.shape_cast %157 : vector<8xf32> to vector<1x1x8xf32>
    tpu.vector_store %arg7[%c2_75, %c1_76, %c0_77], %163 {strides = array<i32>} : memref<4x2x8xf32, #tpu.memory_space<vmem>>, vector<1x1x8xf32>,
    %c3 = arith.constant 3 : index
    %c0_78 = arith.constant 0 : index
    %c0_79 = arith.constant 0 : index
    %164 = vector.load %arg1[%c3, %c0_78, %c0_79] : memref<4x8x32xf32, #tpu.memory_space<vmem>>, vector<1x8x32xf32>
    %165 = vector.shape_cast %164 : vector<1x8x32xf32> to vector<8x32xf32>
    %cst_80 = arith.constant dense<0.000000e+00> : vector<8xf32>
    %166 = vector.multi_reduction <add>, %165, %cst_80 [1] : vector<8x32xf32> to vector<8xf32>
    %167 = vector.shape_cast %166 : vector<8xf32> to vector<8x1xf32>
    %168 = arith.mulf %165, %165 : vector<8x32xf32>
    %cst_81 = arith.constant dense<0.000000e+00> : vector<8xf32>
    %169 = vector.multi_reduction <add>, %168, %cst_81 [1] : vector<8x32xf32> to vector<8xf32>
    %170 = vector.shape_cast %169 : vector<8xf32> to vector<8x1xf32>
    %cst_82 = arith.constant 3.125000e-02 : f32
    %171 = vector.broadcast %cst_82 : f32 to vector<8x1xf32>
    %172 = arith.mulf %167, %171 : vector<8x1xf32>
    %cst_83 = arith.constant 3.125000e-02 : f32
    %173 = vector.broadcast %cst_83 : f32 to vector<8x1xf32>
    %174 = arith.mulf %170, %173 : vector<8x1xf32>
    %175 = arith.mulf %172, %172 : vector<8x1xf32>
    %176 = arith.subf %174, %175 : vector<8x1xf32>
    %cst_84 = arith.constant 9.99999996E-13 : f32
    %177 = vector.broadcast %cst_84 : f32 to vector<8x1xf32>
    %178 = arith.maximumf %176, %177 : vector<8x1xf32>
    %179 = math.sqrt %178 : vector<8x1xf32>
    %180 = tpu.concatenate %172, %179 in 0 : vector<8x1xf32>, vector<8x1xf32> -> vector<16x1xf32>
    %cst_85 = arith.constant dense<0.000000e+00> : vector<16x1xf32>
    %181 = tpu.matmul %1, %180, %cst_85 {dimension_numbers = #tpu.dot_dimension_numbers<[1], [0], [0], [1], [0, 0, 1, 1], [], []>} : vector<16x16xf32>, vector<16x1xf32>, vector<16x1xf32> -> vector<16x1xf32>
    %182 = arith.addf %2, %181 : vector<16x1xf32>
    %cst_86 = arith.constant dense<0.000000e+00> : vector<16x32xf32>
    %183 = tpu.matmul %0, %165, %cst_86 {dimension_numbers = #tpu.dot_dimension_numbers<[1], [0], [0], [1], [0, 0, 1, 1], [], []>} : vector<16x8xf32>, vector<8x32xf32>, vector<16x32xf32> -> vector<16x32xf32>
    %184 = vector.broadcast %182 : vector<16x1xf32> to vector<16x32xf32>
    %185 = arith.addf %183, %184 : vector<16x32xf32>
    %cst_87 = arith.constant 0.000000e+00 : f32
    %186 = vector.broadcast %cst_87 : f32 to vector<16x32xf32>
    %187 = arith.maximumf %185, %186 : vector<16x32xf32>
    %188 = math.tanh %187 : vector<16x32xf32>
    %cst_88 = arith.constant dense<0.000000e+00> : vector<8x32xf32>
    %189 = tpu.matmul %3, %188, %cst_88 {dimension_numbers = #tpu.dot_dimension_numbers<[1], [0], [0], [1], [0, 0, 1, 1], [], []>} : vector<8x16xf32>, vector<16x32xf32>, vector<8x32xf32> -> vector<8x32xf32>
    %190 = vector.broadcast %4 : vector<8x1xf32> to vector<8x32xf32>
    %191 = arith.addf %189, %190 : vector<8x32xf32>
    %cst_89 = arith.constant dense<0xFF800000> : vector<8xf32>
    %192 = vector.multi_reduction <maximumf>, %191, %cst_89 [1] : vector<8x32xf32> to vector<8xf32>
    %193 = vector.shape_cast %192 : vector<8xf32> to vector<8x1xf32>
    %194 = vector.broadcast %193 : vector<8x1xf32> to vector<8x32xf32>
    %195 = arith.subf %191, %194 : vector<8x32xf32>
    %196 = math.exp %195 : vector<8x32xf32>
    %cst_90 = arith.constant dense<0.000000e+00> : vector<8xf32>
    %197 = vector.multi_reduction <add>, %196, %cst_90 [1] : vector<8x32xf32> to vector<8xf32>
    %198 = arith.mulf %196, %165 : vector<8x32xf32>
    %cst_91 = arith.constant dense<0.000000e+00> : vector<8xf32>
    %199 = vector.multi_reduction <add>, %198, %cst_91 [1] : vector<8x32xf32> to vector<8xf32>
    %200 = arith.mulf %198, %165 : vector<8x32xf32>
    %cst_92 = arith.constant dense<0.000000e+00> : vector<8xf32>
    %201 = vector.multi_reduction <add>, %200, %cst_92 [1] : vector<8x32xf32> to vector<8xf32>
    %cst_93 = arith.constant 1.000000e+00 : f32
    %202 = vector.broadcast %cst_93 : f32 to vector<8xf32>
    %203 = arith.divf %202, %197 : vector<8xf32>
    %204 = arith.mulf %199, %203 : vector<8xf32>
    %205 = arith.mulf %201, %203 : vector<8xf32>
    %206 = arith.mulf %204, %204 : vector<8xf32>
    %207 = arith.subf %205, %206 : vector<8xf32>
    %cst_94 = arith.constant 9.99999996E-13 : f32
    %208 = vector.broadcast %cst_94 : f32 to vector<8xf32>
    %209 = arith.maximumf %207, %208 : vector<8xf32>
    %210 = math.sqrt %209 : vector<8xf32>
    %c3_95 = arith.constant 3 : index
    %c0_96 = arith.constant 0 : index
    %c0_97 = arith.constant 0 : index
    %211 = vector.load %arg7[%c3_95, %c0_96, %c0_97] : memref<4x2x8xf32, #tpu.memory_space<vmem>>, vector<1x1x8xf32>
    %212 = vector.shape_cast %211 : vector<1x1x8xf32> to vector<8xf32>
    %213 = vector.shape_cast %204 : vector<8xf32> to vector<1x1x8xf32>
    tpu.vector_store %arg7[%c3_95, %c0_96, %c0_97], %213 {strides = array<i32>} : memref<4x2x8xf32, #tpu.memory_space<vmem>>, vector<1x1x8xf32>,
    %c3_98 = arith.constant 3 : index
    %c1_99 = arith.constant 1 : index
    %c0_100 = arith.constant 0 : index
    %214 = vector.load %arg7[%c3_98, %c1_99, %c0_100] : memref<4x2x8xf32, #tpu.memory_space<vmem>>, vector<1x1x8xf32>
    %215 = vector.shape_cast %214 : vector<1x1x8xf32> to vector<8xf32>
    %216 = vector.shape_cast %210 : vector<8xf32> to vector<1x1x8xf32>
    tpu.vector_store %arg7[%c3_98, %c1_99, %c0_100], %216 {strides = array<i32>} : memref<4x2x8xf32, #tpu.memory_space<vmem>>, vector<1x1x8xf32>,
    return
  }
  func.func @transform_0(%arg0: i32) -> (i32, i32, i32) {
    %c0_i32 = arith.constant 0 : i32
    %c0_i32_0 = arith.constant 0 : i32
    %c0_i32_1 = arith.constant 0 : i32
    return %arg0, %c0_i32, %c0_i32_0 : i32, i32, i32
  }
  func.func @transform_1(%arg0: i32) -> (i32, i32) {
    %c0_i32 = arith.constant 0 : i32
    %c0_i32_0 = arith.constant 0 : i32
    %c0_i32_1 = arith.constant 0 : i32
    return %c0_i32, %c0_i32_0 : i32, i32
  }
  func.func @transform_2(%arg0: i32) -> (i32, i32) {
    %c0_i32 = arith.constant 0 : i32
    %c0_i32_0 = arith.constant 0 : i32
    %c0_i32_1 = arith.constant 0 : i32
    return %c0_i32, %c0_i32_0 : i32, i32
  }
  func.func @transform_3(%arg0: i32) -> (i32, i32) {
    %c0_i32 = arith.constant 0 : i32
    %c0_i32_0 = arith.constant 0 : i32
    %c0_i32_1 = arith.constant 0 : i32
    return %c0_i32, %c0_i32_0 : i32, i32
  }
  func.func @transform_4(%arg0: i32) -> (i32, i32) {
    %c0_i32 = arith.constant 0 : i32
    %c0_i32_0 = arith.constant 0 : i32
    %c0_i32_1 = arith.constant 0 : i32
    return %c0_i32, %c0_i32_0 : i32, i32
  }
  func.func @transform_5(%arg0: i32) -> (i32, i32) {
    %c0_i32 = arith.constant 0 : i32
    %c0_i32_0 = arith.constant 0 : i32
    %c0_i32_1 = arith.constant 0 : i32
    return %c0_i32, %c0_i32_0 : i32, i32
  }
  func.func @transform_6(%arg0: i32) -> (i32, i32, i32) {
    %c0_i32 = arith.constant 0 : i32
    %c0_i32_0 = arith.constant 0 : i32
    %c0_i32_1 = arith.constant 0 : i32
    return %arg0, %c0_i32, %c0_i32_0 : i32, i32, i32
  }
}

</mosaic_0001>

<bundles_post_ra>
// kernel: tpu_custom_call.1
= control target key start
LH: loop header
LB: loop body
LE: loop exit
PB: predicated region body
PF: predicated region fallthrough
CT: control target
= control target key end

     0   :  { %11 = vsyncpa [#allocation3], 0  ;;  %s2407_s0 = inlined_call_operand.hbm [shape: f32[8,8,32], index: 0, kind: input, shape index: {}]   ;;  %s2408_s1 = inlined_call_operand.vmem [shape: f32[16,8], index: 1, kind: input, shape index: {}]   ;;  %s2409_s2 = inlined_call_operand.vmem [shape: f32[16,16], index: 2, kind: input, shape index: {}]   ;;  %s2410_s3 = inlined_call_operand.vmem [shape: f32[16,1], index: 3, kind: input, shape index: {}]   ;;  %s2411_s4 = inlined_call_operand.vmem [shape: f32[8,16], index: 4, kind: input, shape index: {}]   ;;  %s2412_s5 = inlined_call_operand.vmem [shape: f32[8,1], index: 5, kind: input, shape index: {}]   ;;  %s2413_s6 = inlined_call_operand.hbm [shape: f32[8,2,8], index: 6, kind: output, shape index: {}]  }
   0x1   :  { %13 = vsyncpa [#allocation3 + $0x1], 0 }
   0x2   :  { %14 = vsyncpa [#allocation4], 0 }
   0x3   :  { %16 = vsyncpa [#allocation4 + $0x1], 0  ;;  %s2039_s21 = smov 0   ;;  %s2041_s22 = smov 0  }
   0x4   :  { %s2043_s23 = smov 0   ;;  %s2045_s24 = smov 0  }
   0x5 LB: > { %s2060_s25 = sadd.s32 4294967295, %s1992_s24   ;;  %s1603_s26 = sadd.s32 4294967294, %s1992_s24   ;;  %s1992_s24 = sphi %s2045_s24, %s2426_s24   ;;  %s1988_s23 = sphi %s2043_s23, %s2425_s23   ;;  %s1984_s22 = sphi %s2041_s22, %s2424_s22   ;;  %s1980_s21 = sphi %s2039_s21, %s2423_s21  }
   0x6   : > { %s2064_s27 = sadd.s32 1, %s1992_s24   ;;  %s29_s28 = sadd.s32 1, %s1988_s23 }
   0x7   : > { %s26_s29 = ssub.s32 %s1992_s24, %s2064_s27  ;;  %p36_p0 = scmp.ne.s32.totalorder %s1988_s23, %s1984_s22 }
   0x8   : > { %p27_p1 = scmp.eq.s32.totalorder %s26_s29, 0  ;;  %p37_p2 = scmp.eq.s32.totalorder %s1992_s24, 0 }
   0x9   : > { %p42_p3 = scmp.ne.s32.totalorder %s1984_s22, %s1980_s21  ;;  %p43_p4 = scmp.eq.s32.totalorder %s2060_s25, 0 }
   0xa   : > { %s2076_s30 = scalar_select %p27_p1, %s1988_s23, %s29_s28  }
   0xb   : > { %p2078_p5 = por %p37_p2, %p36_p0  ;;  %p2082_p6 = por %p43_p4, %p42_p3 }
   0xc   : > { %p171_p7 = scmp.eq.s32.totalorder %s2060_s25, 1  ;;  %p177_p8 = scmp.eq.s32.totalorder %s1603_s26, 1 }
   0xd   : > { %p1804_p10 = scmp.lt.s32.totalorder %s1992_s24, 2  ;;  %s212_s11 = sand.u32 1, %s1988_s23  }
   0xe   : > { %p2089_p11 = por %p171_p7, %p36_p0  ;;  %p2093_p12 = por %p177_p8, %p42_p3 }
   0xf   : > { %s1646_s12 = sshll.u32 %s1992_s24, 9  ;;  %s1606_s13 = sshll.u32 %s212_s11, 5 }
  0x10   : > { %s2417_s9 = scalar_select %p2089_p11, 1, 0 }
  0x11   : > { %s2418_s10 = scalar_select %p2093_p12, 1, 0 }
  0x12   : > { %s2102_s16 = scalar_lea.hbm %s2407_s0, %s1646_s12  ;;  %s216_s17 = scalar_lea.vmem [#allocation2], %s1606_s13 }
  0x13   : > { %s223_s18 = sshll.u32 %s216_s17, 4  ;;  %p2106_p13 = pnand %p1804_p10, %p2078_p5  ;;  %s2110_s18 = int_to_ptr.vmem [resolvable:$true] %s223_s18 }
  0x14   : > { %s2112_s20 = scalar_lea.sflag [#allocation3], %s212_s11  ;;  %s1896_s26 = scalar_lea.hbm %s2102_s16, 512 }
  0x15   : > { %p1897_p0 = scmp.ne.s32.totalorder %s2102_s16, %s1896_s26  ;;  %p1898_p1 = pneg %p2106_p13 }
  0x16   : > { %s1901_s7 = scalar_lea.hbm %s2407_s0, 1024  ;;  %p1902_p4 = scmp.lt.u32.totalorder %s2102_s16, %s2407_s0 }
  0x17   : > { %p1899_p2 = pnand %p1898_p1, %p1897_p0  ;;  %p1903_p5 = scmp.lt.u32.totalorder %s1901_s7, %s1896_s26 }
  0x18   : > { %p1905_p8 = scmp.lt.u32.totalorder %s1896_s26, %s2102_s16 }
  0x19   : > { %p1900_p3 = pneg %p1899_p2  ;;  %p1904_p7 = por %p1903_p5, %p1902_p4 }
  0x1b   : > { %p1906_p10 = por %p1905_p8, %p1904_p7 }
  0x1d   : > { %p1907_p9 = pnand %p1906_p10, %p1900_p3 }
  0x1f   : > { %1910 = shalt.err (!%p1907_p9)
}
  0x20   : > { %s1911_s11 = scalar_lea.vmem %s2110_s18, 512  ;;  %s1994_s14 = smov [#allocation2]  }
  0x21   : > { %p1912_p0 = scmp.ne.s32.totalorder %s2110_s18, %s1911_s11  ;;  %s1916_s15 = sshll.u32 %s1994_s14, 4  ;;  %s1917_s15 = int_to_ptr.vmem [resolvable:$false] %s1916_s15 }
  0x22   : > { %s1918_s17 = scalar_lea.vmem %s1917_s15, 1024  ;;  %p1919_p11 = scmp.lt.s32.totalorder %s2110_s18, %s1917_s15 }
  0x23   : > { %p1914_p2 = pnand %p1912_p0, %p1898_p1  ;;  %p1920_p4 = scmp.lt.s32.totalorder %s1918_s17, %s1911_s11 }
  0x25   : > { %p1915_p12 = pneg %p1914_p2  ;;  %p1921_p5 = por %p1920_p4, %p1919_p11 }
  0x27   : > { %p1922_p7 = pnand %p1921_p5, %p1915_p12 }
  0x29   : > { %1925 = shalt.err (!%p1922_p7)
}
  0x2a   : > { %s1995_s26 = smov 128   ;;  %s1996_s28 = smov 8  }
  0x2b   : > { %1799 = dma.hbm_to_vmem [thread:$0]  (!%p2106_p13), %s2102_s16, 512, %s2110_s18, %s2112_s20, %s1995_s26, %s1995_s26, %s1996_s28  }
  0x2c   : > { %p1609_p9 = scmp.ge.s32.totalorder %s1992_s24, 1  ;;  %p231_p1 = scmp.lt.s32.totalorder %s1992_s24, 3 }
  0x2e   : > { %p232_p3 = pnand %p1609_p9, %p231_p1 }
  0x2f   : > { %s2143_s29 = sand.u32 (!%p232_p3), 1, %s1984_s22  }
  0x30   : > { %235 = sbr.rel (%p232_p3) target bundleno = 1874 (0x752), region = 44  ;;  %s1610_s7 = sshll.u32 (!%p232_p3), %s2143_s29, 5 }
  0x31   : > { %s238_s12 = scalar_lea.sflag (!%p232_p3), [#allocation3], %s2143_s29  ;;  %s2147_s13 = scalar_lea.vmem (!%p232_p3), [#allocation2], %s1610_s7 }
  0x37   : > { %1971 = dma.done.wait (%p2082_p6), %s238_s12, 512  }
  0x38   : > { %1973 = vsyncadd (%p2082_p6), %s238_s12, 4294966784  ;;  %vm281_vm0 = vcmask 261120   ;;  %v2154_v0 = vld [vmem:[%s2147_s13] sm:$0xff]  ;;  %v2157_v1 = vld [vmem:[%s2147_s13 + $0x8] sm:$0xff]  ;;  %vm301_vm1 = vcmask 130048   ;;  %vm395_vm2 = vcmask 64512  }
  0x39   : > { %v282_v2 = vsel %vm281_vm0, %v2154_v0, 0.0  ;;  %v285_v3 = vmul.f32 %v2154_v0, %v2154_v0  ;;  %v609_v4 = vsel %vm281_vm0, %v2157_v1, 0.0  ;;  %v612_v5 = vmul.f32 %v2157_v1, %v2157_v1  ;;  %1695 = vmatprep.subr.mxu1 %v2154_v0  ;;  %v2174_v8 = vld [vmem:[%s2409_s2] sm:$0xff]  ;;  %v2186_v10 = vld [vmem:[%s2408_s1 + $0x8] sm:$0xff]  ;;  %v2222_v51 = vld [vmem:[%s2147_s13 + $0x10] sm:$0xff]  ;;  %s1611_s18 = sshll.u32 %s2143_s29, 3 }
  0x3a   : > { %283 = vadd.xlane.f32.xlu0 %v282_v2  ;;  %610 = vadd.xlane.f32.xlu1 %v609_v4  ;;  %v2181_v9 = vld [vmem:[%s2408_s1] sm:$0xff]  ;;  %v2195_v37 = vld [vmem:[%s2409_s2 + $0x8] sm:$0xff]  ;;  %v1997_v38 = vmov 0   ;;  %v1998_v49 = vmov 0.0|0.0   ;;  %vm1999_vm7 = vmmov 0   ;;  %v2000_v50 = vmov 0.0  }
  0x3b   : > { %v286_v6 = vsel %vm281_vm0, %v285_v3, 0.0  ;;  %v613_v7 = vsel %vm281_vm0, %v612_v5, 0.0  ;;  %1696 = vmatpush3.msra.mxu1 %v2154_v0  ;;  %1692 = vmatprep.mubr.msk.f32.mxu0 %vm301_vm1, %v2174_v8  ;;  %v2206_v40 = vld [vmem:[%s2410_s3 + $0x8] sm:$0xff]  ;;  %v2211_v41 = vld [vmem:[%s2410_s3] sm:$0xff]  ;;  %v915_v52 = vmul.f32 %v2222_v51, %v2222_v51  ;;  %v912_v54 = vsel %vm281_vm0, %v2222_v51, 0.0  ;;  %v2232_v57 = vld [vmem:[%s2147_s13 + $0x18] sm:$0xff] }
  0x3c   : > { %1697 = vmatprep.mubr.msk.f32.mxu1 %vm395_vm2, %v2181_v9  ;;  %1847 = vset.pattern.permute.xlu1 %v1997_v38  ;;  %v1218_v58 = vmul.f32 %v2232_v57, %v2232_v57  ;;  %v1215_v60 = vsel %vm281_vm0, %v2232_v57, 0.0  ;;  %v279_v61 = vld [vmem:[%s2412_s5] sm:$0xff]  ;;  %vm598_vm12 = vcmask 57344   ;;  %s2325_s19 = scalar_lea.vmem [#allocation5], %s1611_s18  ;;  %s1647_s20 = sshll.u32 %s2060_s25, 7 }
  0x3d   : > { %1698 = vmatmul.mubr.msk.f32.vlgmr.msra.gmra.mrb[0].mxu1 %vm395_vm2, %v2186_v10  ;;  %1846 = vset.pattern.permute.xlu0 %v1997_v38  ;;  %v916_v53 = vsel %vm281_vm0, %v915_v52, 0.0  ;;  %s1530_s11 = sshll.u32 %s2325_s19, 4  ;;  %s2358_s17 = scalar_lea.hbm %s2413_s6, %s1647_s20  ;;  %s2360_s11 = int_to_ptr.vmem [resolvable:$true] %s1530_s11 }
  0x3e   : > { %287 = vadd.xlane.f32.xlu0 %v286_v6  ;;  %614 = vadd.xlane.f32.xlu1 %v613_v7  ;;  %v1219_v59 = vsel %vm281_vm0, %v1218_v58, 0.0  ;;  %s1517_s25 = scalar_lea.sflag [#allocation4], %s2143_s29  ;;  %s1926_s26 = scalar_lea.vmem %s2360_s11, 128 }
  0x3f   : > { %1768 = vmatprep.subr.bf16.mxu1 %v1998_v49  ;;  %1704 = vmatprep.mubr.msk.f32.mxu1 %vm1999_vm7, %v2000_v50  ;;  %p1927_p6 = scmp.ne.s32.totalorder %s2360_s11, %s1926_s26  ;;  %p2420_p11 = scmp.ne.s32.totalorder %s2417_s9, 0 }
  0x40   : > { %s2001_s28 = smov [#allocation5]  }
  0x41   : > { %p1928_p12 = pnand %p1927_p6, %p2420_p11  ;;  %s1930_s7 = sshll.u32 %s2001_s28, 4  ;;  %s1931_s7 = int_to_ptr.vmem [resolvable:$false] %s1930_s7 }
  0x42   : > { %s1932_s12 = scalar_lea.vmem %s1931_s7, 256  ;;  %p1933_p8 = scmp.lt.s32.totalorder %s2360_s11, %s1931_s7 }
  0x43   : > { %p1929_p13 = pneg %p1928_p12  ;;  %p1934_p10 = scmp.lt.s32.totalorder %s1932_s12, %s1926_s26 }
  0x45   : > { %p1935_p0 = por %p1934_p10, %p1933_p8 }
  0x47   : > { %p1936_p2 = pnand %p1935_p0, %p1929_p13 }
  0xc7   : > { %v284_v11 = vpop.xlane.xlu0 %283  ;;  %v611_v12 = vpop.xlane.xlu1 %610 }
  0xc8   : > { %v289_v13 = vmul.f32 0.03125, %v284_v11  ;;  %v616_v14 = vmul.f32 0.03125, %v611_v12  ;;  %v2245_v12 = vld [vmem:[%s2411_s4] sm:$0xff] }
  0xca   : > { %v618_v15 = vmul.f32 %v616_v14, %v616_v14  ;;  %v291_v18 = vmul.f32 %v289_v13, %v289_v13 }
  0xcb   : > { %v288_v16 = vpop.xlane.xlu0 %287  ;;  %v615_v17 = vpop.xlane.xlu1 %614 }
  0xcc   : > { %v290_v19 = vmul.f32 0.03125, %v288_v16  ;;  %v617_v20 = vmul.f32 0.03125, %v615_v17 }
  0xce   : > { %v292_v21 = vsub.f32 %v290_v19, %v291_v18  ;;  %v619_v22 = vsub.f32 %v617_v20, %v618_v15 }
  0xd0   : > { %v293_v23 = vmax.f32 %v292_v21, 1e-12  ;;  %v620_v24 = vmax.f32 %v619_v22, 1e-12 }
  0xd2   : > { %1848 = vrsqrt.f32 %v293_v23  ;;  %vm623_vm3 = vcmp.eq.f32.partialorder %v620_v24, inf  ;;  %v626_v28 = vand.u32 2147483648, %v620_v24  ;;  %vm296_vm4 = vcmp.eq.f32.partialorder %v293_v23, inf }
  0xd3   : > { %1850 = vrsqrt.f32 %v620_v24  ;;  %v299_v29 = vand.u32 2147483648, %v293_v23  ;;  %vm625_vm5 = vcmp.eq.f32.partialorder %v620_v24, 0.0  ;;  %vm298_vm6 = vcmp.eq.f32.partialorder %v293_v23, 0.0 }
  0xdc   : > { %v1849_v25 = vpop.eup %1848 }
  0xdd   : > { %v1851_v26 = vpop.eup %1850  ;;  %v295_v27 = vmul.f32 %v1849_v25, %v293_v23 }
  0xde   : > { %v622_v30 = vmul.f32 %v1851_v26, %v620_v24 }
  0xdf   : > { %v297_v31 = vsel %vm296_vm4, %v293_v23, %v295_v27 }
  0xe0   : > { %v300_v32 = vsel %vm298_vm6, %v299_v29, %v297_v31  ;;  %v624_v33 = vsel %vm623_vm3, %v620_v24, %v622_v30 }
  0xe1   : > { %v1764_v34 = vpack.c.bf16 %v300_v32, %v289_v13  ;;  %v627_v35 = vsel %vm625_vm5, %v626_v28, %v624_v33 }
  0xe2   : > { %v1771_v36 = vpack.c.bf16 %v627_v35, %v616_v14 }
  0xe3   : > { %1765 = vmatprep.subr.bf16.mxu0 %v1764_v34 }
  0xe4   : > { %1767 = vmatpush3.bf16.msra.mxu0 %v1764_v34 }
  0xe5   : > { %1772 = vmatprep.subr.bf16.mxu0 %v1771_v36 }
  0xe7   : > { %1693 = vmatmul.mubr.msk.f32.vlgmr.msra.gmra.mrb[0].mxu0 %vm301_vm1, %v2195_v37 }
  0xe8   : > { %1774 = vmatpush3.bf16.msra.mxu0 %v1771_v36  ;;  %1711 = vmatprep.mubr.msk.f32.mxu0 %vm301_vm1, %v2174_v8 }
  0xe9   : > { %1775 = vmatprep.subr.bf16.mxu0 %v1998_v49 }
  0xeb   : > { %1712 = vmatmul.mubr.msk.f32.vlgmr.msra.gmra.mrb[2].mxu0 %vm301_vm1, %v2195_v37 }
  0xec   : > { %1723 = vmatprep.mubr.msk.f32.mxu0 %vm1999_vm7, %v2000_v50 }
 0x110   : > { %v1699_v39 = vpop.f32.mrb[0].mxu1 }
 0x111   : > { %v468_v46 = vpop.f32.mrb[1].mxu1 }
 0x1ba   : > { %v1694_v42 = vpop.f32.mrb[0].mxu0 }
 0x1bb   : > { %v384_v43 = vadd.f32 %v1694_v42, %v2206_v40  ;;  %v374_v44 = vpop.f32.mrb[1].mxu0 }
 0x1bc   : > { %v383_v45 = vadd.f32 %v374_v44, %v2211_v41 }
 0x1bd   : > { %392 = vperm.xlu1 %1847, %v384_v43  }
 0x1be   : > { %387 = vperm.xlu0 %1846, %v383_v45   ;;  %v1713_v47 = vpop.f32.mrb[2].mxu0 }
 0x1bf   : > { %v694_v48 = vpop.f32.mrb[3].mxu0  ;;  %v704_v56 = vadd.f32 %v1713_v47, %v2206_v40 }
 0x1c0   : > { %v703_v55 = vadd.f32 %v694_v48, %v2211_v41 }
 0x1dd   : > { %917 = vadd.xlane.f32.xlu0 %v916_v53 }
 0x1e1   : > { %913 = vadd.xlane.f32.xlu1 %v912_v54  ;;  %1220 = vadd.xlane.f32.xlu0 %v1219_v59 }
 0x1f2   : > { %707 = vperm.xlu1 %1847, %v703_v55  }
 0x1f6   : > { %712 = vperm.xlu1 %1847, %v704_v56  }
 0x21a   : > { %1216 = vadd.xlane.f32.xlu1 %v1215_v60 }
 0x22b   : > { %483 = vperm.xlu1 %1847, %v279_v61  }
 0x23c   : > { %v393_v62 = vpop.permute.xlu1 %392 }
 0x23d   : > { %v474_v63 = vadd.f32 %v1699_v39, %v393_v62  ;;  %v388_v2 = vpop.permute.xlu0 %387 }
 0x23e   : > { %v469_v3 = vadd.f32 %v468_v46, %v388_v2 }
 0x23f   : > { %v478_v4 = vmax.f32 %v474_v63, 0.0 }
 0x240   : > { %v477_v5 = vmax.f32 %v469_v3, 0.0 }
 0x241   : > { %1852 = vtanh.f32 %v478_v4 }
 0x242   : > { %1854 = vtanh.f32 %v477_v5 }
 0x24b   : > { %v1853_v6 = vpop.eup %1852 }
 0x24c   : > { %v1855_v7 = vpop.eup %1854 }
 0x24d   : > { %v1769_v11 = vpack.c.bf16 %v1853_v6, %v1855_v7 }
 0x24f   : > { %1770 = vmatpush3.bf16.msra.mxu1 %v1769_v11 }
 0x250   : > { %1714 = vmatprep.subr.mxu1 %v2157_v1 }
 0x252   : > { %1705 = vmatmul.mubr.msk.f32.vlgmr.msra.gmra.mrb[2].mxu1 %vm301_vm1, %v2245_v12 }
 0x253   : > { %1715 = vmatpush3.msra.mxu1 %v2157_v1  ;;  %1716 = vmatprep.mubr.msk.f32.mxu1 %vm395_vm2, %v2181_v9 }
 0x256   : > { %1717 = vmatmul.mubr.msk.f32.vlgmr.msra.gmra.mrb[4].mxu1 %vm395_vm2, %v2186_v10 }
 0x257   : > { %1730 = vmatprep.mubr.msk.f32.mxu1 %vm301_vm1, %v2174_v8 }
 0x26a   : > { %v918_v13 = vpop.xlane.xlu0 %917 }
 0x26b   : > { %v920_v16 = vmul.f32 0.03125, %v918_v13 }
 0x26e   : > { %v914_v14 = vpop.xlane.xlu1 %913  ;;  %v1221_v30 = vpop.xlane.xlu0 %1220 }
 0x26f   : > { %v919_v15 = vmul.f32 0.03125, %v914_v14  ;;  %v1223_v32 = vmul.f32 0.03125, %v1221_v30 }
 0x271   : > { %v921_v17 = vmul.f32 %v919_v15, %v919_v15 }
 0x272   : > { %v708_v26 = vpop.permute.xlu1 %707 }
 0x273   : > { %v922_v18 = vsub.f32 %v920_v16, %v921_v17 }
 0x275   : > { %v923_v19 = vmax.f32 %v922_v18, 1e-12 }
 0x276   : > { %v713_v27 = vpop.permute.xlu1 %712 }
 0x277   : > { %1856 = vrsqrt.f32 %v923_v19  ;;  %vm926_vm8 = vcmp.eq.f32.partialorder %v923_v19, inf  ;;  %v929_v21 = vand.u32 2147483648, %v923_v19  ;;  %vm928_vm9 = vcmp.eq.f32.partialorder %v923_v19, 0.0 }
 0x281   : > { %v1857_v20 = vpop.eup %1856 }
 0x282   : > { %v925_v22 = vmul.f32 %v1857_v20, %v923_v19 }
 0x284   : > { %v927_v23 = vsel %vm926_vm8, %v923_v19, %v925_v22 }
 0x285   : > { %v930_v24 = vsel %vm928_vm9, %v929_v21, %v927_v23 }
 0x286   : > { %v1778_v25 = vpack.c.bf16 %v930_v24, %v919_v15 }
 0x288   : > { %1779 = vmatprep.subr.bf16.mxu1 %v1778_v25 }
 0x289   : > { %1781 = vmatpush3.bf16.msra.mxu1 %v1778_v25 }
 0x28a   : > { %1782 = vmatprep.subr.bf16.mxu1 %v1998_v49 }
 0x28c   : > { %1731 = vmatmul.mubr.msk.f32.vlgmr.msra.gmra.mrb[6].mxu1 %vm301_vm1, %v2195_v37 }
 0x28d   : > { %1742 = vmatprep.mubr.msk.f32.mxu1 %vm1999_vm7, %v2000_v50 }
 0x2a7   : > { %v1217_v28 = vpop.xlane.xlu1 %1216 }
 0x2a8   : > { %v1222_v29 = vmul.f32 0.03125, %v1217_v28 }
 0x2aa   : > { %v1224_v31 = vmul.f32 %v1222_v29, %v1222_v29 }
 0x2ab   : > { %v2281_v2 = vpop.permute.xlu1 %483 }
 0x2ac   : > { %v1225_v33 = vsub.f32 %v1223_v32, %v1224_v31 }
 0x2ae   : > { %v1226_v34 = vmax.f32 %v1225_v33, 1e-12 }
 0x2b0   : > { %1858 = vrsqrt.f32 %v1226_v34  ;;  %vm1229_vm10 = vcmp.eq.f32.partialorder %v1226_v34, inf  ;;  %v1232_v48 = vand.u32 2147483648, %v1226_v34  ;;  %vm1231_vm11 = vcmp.eq.f32.partialorder %v1226_v34, 0.0 }
 0x2ba   : > { %v1859_v46 = vpop.eup %1858 }
 0x2bb   : > { %v1228_v47 = vmul.f32 %v1859_v46, %v1226_v34 }
 0x2bd   : > { %v1230_v52 = vsel %vm1229_vm10, %v1226_v34, %v1228_v47 }
 0x2be   : > { %v1233_v56 = vsel %vm1231_vm11, %v1232_v48, %v1230_v52 }
 0x2bf   : > { %v1785_v58 = vpack.c.bf16 %v1233_v56, %v1222_v29 }
 0x325   : > { %v2262_v35 = vpop.f32.mrb[2].mxu1 }
 0x326   : > { %v1706_v36 = vpop.f32.mrb[3].mxu1 }
 0x329   : > { %v1718_v38 = vpop.f32.mrb[4].mxu1 }
 0x32a   : > { %v787_v39 = vadd.f32 %v1718_v38, %v713_v27  ;;  %v781_v42 = vpop.f32.mrb[5].mxu1 }
 0x32b   : > { %v782_v43 = vadd.f32 %v781_v42, %v708_v26 }
 0x32c   : > { %v791_v44 = vmax.f32 %v787_v39, 0.0 }
 0x32d   : > { %v790_v45 = vmax.f32 %v782_v43, 0.0 }
 0x32e   : > { %1860 = vtanh.f32 %v791_v44 }
 0x32f   : > { %1862 = vtanh.f32 %v790_v45 }
 0x338   : > { %v1861_v53 = vpop.eup %1860 }
 0x339   : > { %v1863_v54 = vpop.eup %1862 }
 0x33a   : > { %v1776_v55 = vpack.c.bf16 %v1861_v53, %v1863_v54 }
 0x33c   : > { %1777 = vmatpush3.bf16.msra.mxu0 %v1776_v55 }
 0x33d   : > { %1733 = vmatprep.subr.mxu0 %v2222_v51 }
 0x33f   : > { %1724 = vmatmul.mubr.msk.f32.vlgmr.msra.gmra.mrb[4].mxu0 %vm301_vm1, %v2245_v12 }
 0x340   : > { %1734 = vmatpush3.msra.mxu0 %v2222_v51  ;;  %1735 = vmatprep.mubr.msk.f32.mxu0 %vm395_vm2, %v2181_v9 }
 0x341   : > { %1786 = vmatprep.subr.bf16.mxu0 %v1785_v58 }
 0x343   : > { %1736 = vmatmul.mubr.msk.f32.vlgmr.msra.gmra.mrb[6].mxu0 %vm395_vm2, %v2186_v10 }
 0x344   : > { %1788 = vmatpush3.bf16.msra.mxu0 %v1785_v58  ;;  %1749 = vmatprep.mubr.msk.f32.mxu0 %vm301_vm1, %v2174_v8 }
 0x345   : > { %1789 = vmatprep.subr.bf16.mxu0 %v1998_v49 }
 0x347   : > { %1750 = vmatmul.mubr.msk.f32.vlgmr.msra.gmra.mrb[8].mxu0 %vm301_vm1, %v2195_v37 }
 0x348   : > { %1761 = vmatprep.mubr.msk.f32.mxu0 %vm1999_vm7, %v2000_v50 }
 0x35f   : > { %v1732_v59 = vpop.f32.mrb[6].mxu1 }
 0x360   : > { %v997_v60 = vpop.f32.mrb[7].mxu1  ;;  %v1007_v62 = vadd.f32 %v1732_v59, %v2206_v40 }
 0x361   : > { %v1006_v61 = vadd.f32 %v997_v60, %v2211_v41 }
 0x363   : > { %1010 = vperm.xlu0 %1846, %v1006_v61  }
 0x367   : > { %1015 = vperm.xlu0 %1846, %v1007_v62  }
 0x3e2   : > { %v1011_v63 = vpop.permute.xlu0 %1010 }
 0x3e6   : > { %v1016_v4 = vpop.permute.xlu0 %1015 }
 0x412   : > { %v860_v8 = vpop.f32.mrb[4].mxu0 }
 0x413   : > { %v861_v49 = vadd.f32 %v860_v8, %v2281_v2  ;;  %v1725_v3 = vpop.f32.mrb[5].mxu0 }
 0x415   : > { %v864_v37 = vsel %vm281_vm0, %v861_v49, -inf }
 0x416   : > { %865 = vmax.xlane.f32.xlu1 %v864_v37  ;;  %v1737_v50 = vpop.f32.mrb[6].mxu0 }
 0x417   : > { %v1090_v5 = vadd.f32 %v1737_v50, %v1016_v4  ;;  %v1084_v6 = vpop.f32.mrb[7].mxu0 }
 0x418   : > { %v1085_v7 = vadd.f32 %v1084_v6, %v1011_v63 }
 0x419   : > { %v1094_v11 = vmax.f32 %v1090_v5, 0.0  ;;  %v591_v5 = vlaneseq }
 0x41a   : > { %v1093_v13 = vmax.f32 %v1085_v7, 0.0  ;;  %v1751_v14 = vpop.f32.mrb[8].mxu0 }
 0x41b   : > { %1864 = vtanh.f32 %v1094_v11  ;;  %v1300_v15 = vpop.f32.mrb[9].mxu0  ;;  %v1310_v17 = vadd.f32 %v1751_v14, %v2206_v40  ;;  %v556_v40 = vadd.f32 %v2262_v35, %v2281_v2  ;;  %v594_v7 = vshrl.u32 %v591_v5, 7 }
 0x41c   : > { %1866 = vtanh.f32 %v1093_v13  ;;  %v1309_v16 = vadd.f32 %v1300_v15, %v2211_v41 }
 0x41d   : > { %v559_v41 = vsel %vm281_vm0, %v556_v40, -inf }
 0x41e   : > { %1313 = vperm.xlu0 %1846, %v1309_v16  }
 0x422   : > { %1318 = vperm.xlu0 %1846, %v1310_v17  }
 0x425   : > { %v1865_v18 = vpop.eup %1864 }
 0x426   : > { %v1867_v19 = vpop.eup %1866 }
 0x427   : > { %v1783_v20 = vpack.c.bf16 %v1865_v18, %v1867_v19 }
 0x429   : > { %1784 = vmatpush3.bf16.msra.mxu1 %v1783_v20 }
 0x42a   : > { %1752 = vmatprep.subr.mxu1 %v2232_v57 }
 0x42c   : > { %1743 = vmatmul.mubr.msk.f32.vlgmr.msra.gmra.mrb[8].mxu1 %vm301_vm1, %v2245_v12 }
 0x42d   : > { %1753 = vmatpush3.msra.mxu1 %v2232_v57  ;;  %1754 = vmatprep.mubr.msk.f32.mxu1 %vm395_vm2, %v2181_v9 }
 0x430   : > { %1755 = vmatmul.mubr.msk.f32.vlgmr.msra.gmra.mrb[10].mxu1 %vm395_vm2, %v2186_v10 }
 0x441   : > { %560 = vmax.xlane.f32.xlu0 %v559_v41 }
 0x49d   : > { %v1314_v21 = vpop.permute.xlu0 %1313 }
 0x4a1   : > { %v1319_v26 = vpop.permute.xlu0 %1318 }
 0x4a3   : > { %v866_v36 = vpop.xlane.xlu1 %865 }
 0x4a4   : > { %v867_v38 = vsub.f32 %v861_v49, %v866_v36 }
 0x4a6   : > { %v868_v43 = vmul.f32 1.442695, %v867_v38 }
 0x4ce   : > { %v561_v34 = vpop.xlane.xlu0 %560 }
 0x4cf   : > { %v562_v35 = vsub.f32 %v556_v40, %v561_v34 }
 0x4d1   : > { %v563_v39 = vmul.f32 1.442695, %v562_v35 }
 0x4ff   : > { %v1163_v22 = vpop.f32.mrb[8].mxu1 }
 0x500   : > { %v1164_v23 = vadd.f32 %v1163_v22, %v2281_v2  ;;  %v1744_v24 = vpop.f32.mrb[9].mxu1 }
 0x502   : > { %v1167_v25 = vsel %vm281_vm0, %v1164_v23, -inf }
 0x503   : > { %1168 = vmax.xlane.f32.xlu0 %v1167_v25  ;;  %v1756_v27 = vpop.f32.mrb[10].mxu1 }
 0x504   : > { %v1393_v9 = vadd.f32 %v1756_v27, %v1319_v26  ;;  %v1387_v28 = vpop.f32.mrb[11].mxu1 }
 0x505   : > { %v1388_v29 = vadd.f32 %v1387_v28, %v1314_v21 }
 0x506   : > { %v1397_v10 = vmax.f32 %v1393_v9, 0.0 }
 0x507   : > { %v1396_v30 = vmax.f32 %v1388_v29, 0.0 }
 0x508   : > { %1868 = vtanh.f32 %v1397_v10 }
 0x509   : > { %1870 = vtanh.f32 %v1396_v30 }
 0x50a   : > { %1872 = vpow2.f32 %v563_v39 }
 0x50b   : > { %1874 = vpow2.f32 %v868_v43 }
 0x512   : > { %v1869_v31 = vpop.eup %1868 }
 0x513   : > { %v1871_v32 = vpop.eup %1870 }
 0x514   : > { %v1790_v33 = vpack.c.bf16 %v1869_v31, %v1871_v32  ;;  %v1873_v53 = vpop.eup %1872 }
 0x515   : > { %v1875_v54 = vpop.eup %1874  ;;  %v568_v59 = vmul.f32 %v1873_v53, %v2154_v0 }
 0x516   : > { %1791 = vmatpush3.bf16.msra.mxu0 %v1790_v33  ;;  %v870_v55 = vsel %vm281_vm0, %v1875_v54, 0.0  ;;  %v873_v17 = vmul.f32 %v1875_v54, %v2157_v1 }
 0x517   : > { %v569_v60 = vsel %vm281_vm0, %v568_v59, 0.0  ;;  %v572_v63 = vmul.f32 %v568_v59, %v2154_v0  ;;  %v592_v0 = vand.u32 127, %v591_v5 }
 0x518   : > { %v874_v40 = vsel %vm281_vm0, %v873_v17, 0.0  ;;  %v877_v41 = vmul.f32 %v2157_v1, %v873_v17 }
 0x519   : > { %1762 = vmatmul.mubr.msk.f32.vlgmr.msra.gmra.mrb[10].mxu0 %vm301_vm1, %v2245_v12  ;;  %v565_v12 = vsel %vm281_vm0, %v1873_v53, 0.0 }
 0x51a   : > { %v878_v24 = vsel %vm281_vm0, %v877_v41, 0.0 }
 0x590   : > { %v1169_v42 = vpop.xlane.xlu0 %1168 }
 0x591   : > { %v1170_v44 = vsub.f32 %v1164_v23, %v1169_v42 }
 0x593   : > { %v1171_v45 = vmul.f32 1.442695, %v1170_v44 }
 0x595   : > { %1876 = vpow2.f32 %v1171_v45 }
 0x59f   : > { %v1877_v56 = vpop.eup %1876 }
 0x5a0   : > { %v1173_v58 = vsel %vm281_vm0, %v1877_v56, 0.0  ;;  %v1176_v61 = vmul.f32 %v1877_v56, %v2222_v51 }
 0x5a2   : > { %v1177_v62 = vsel %vm281_vm0, %v1176_v61, 0.0  ;;  %v1180_v8 = vmul.f32 %v2222_v51, %v1176_v61  ;;  %v2318_v51 = vsub.s32 %v592_v0, %v594_v7 }
 0x5a4   : > { %v1181_v49 = vsel %vm281_vm0, %v1180_v8, 0.0 }
 0x5ec   : > { %v1466_v46 = vpop.f32.mrb[10].mxu0 }
 0x5ed   : > { %v1467_v47 = vadd.f32 %v1466_v46, %v2281_v2  ;;  %v1763_v48 = vpop.f32.mrb[11].mxu0  ;;  %v573_v2 = vsel %vm281_vm0, %v572_v63, 0.0 }
 0x5ef   : > { %v1470_v52 = vsel %vm281_vm0, %v1467_v47, -inf }
 0x5f0   : > { %1471 = vmax.xlane.f32.xlu0 %v1470_v52 }
 0x5f4   : > { %566 = vadd.xlane.f32.xlu0 %v565_v12 }
 0x5f8   : > { %871 = vadd.xlane.f32.xlu0 %v870_v55 }
 0x5fc   : > { %1174 = vadd.xlane.f32.xlu0 %v1173_v58 }
 0x600   : > { %570 = vadd.xlane.f32.xlu0 %v569_v60 }
 0x604   : > { %1178 = vadd.xlane.f32.xlu0 %v1177_v62 }
 0x608   : > { %574 = vadd.xlane.f32.xlu0 %v573_v2 }
 0x60c   : > { %1182 = vadd.xlane.f32.xlu0 %v1181_v49 }
 0x67d   : > { %v1472_v3 = vpop.xlane.xlu0 %1471 }
 0x67e   : > { %v1473_v37 = vsub.f32 %v1467_v47, %v1472_v3 }
 0x680   : > { %v1474_v4 = vmul.f32 1.442695, %v1473_v37 }
 0x681   : > { %v567_v50 = vpop.xlane.xlu0 %566 }
 0x682   : > { %1878 = vpow2.f32 %v1474_v4 }
 0x683   : > { %1880 = vrcp.f32 %v567_v50 }
 0x685   : > { %v2315_v6 = vpop.xlane.xlu0 %871 }
 0x689   : > { %v1175_v11 = vpop.xlane.xlu0 %1174 }
 0x68a   : > { %1882 = vrcp.f32 %v1175_v11 }
 0x68c   : > { %v1879_v13 = vpop.eup %1878 }
 0x68d   : > { %v1881_v14 = vpop.eup %1880  ;;  %v571_v15 = vpop.xlane.xlu0 %570  ;;  %v1476_v16 = vsel %vm281_vm0, %v1879_v13, 0.0  ;;  %v1479_v25 = vmul.f32 %v1879_v13, %v2232_v57 }
 0x68e   : > { %v578_v18 = vmul.f32 %v1881_v14, %v571_v15  ;;  %1477 = vadd.xlane.f32.xlu1 %v1476_v16 }
 0x68f   : > { %v1480_v29 = vsel %vm281_vm0, %v1479_v25, 0.0  ;;  %v1483_v10 = vmul.f32 %v2232_v57, %v1479_v25 }
 0x690   : > { %v596_v19 = vrot.slane %v578_v18, %v2318_v51  ;;  %v580_v26 = vmul.f32 %v578_v18, %v578_v18 }
 0x691   : > { %v1179_v20 = vpop.xlane.xlu0 %1178  ;;  %v1484_v34 = vsel %vm281_vm0, %v1483_v10, 0.0 }
 0x692   : > { %599 = vst.msk [vmem:[%s2325_s19] sm:$0x1] %vm598_vm12, %v596_v19  ;;  %875 = vadd.xlane.f32.xlu1 %v874_v40 }
 0x694   : > { %v1883_v21 = vpop.eup %1882 }
 0x695   : > { %v1186_v22 = vmul.f32 %v1883_v21, %v1179_v20  ;;  %v575_v23 = vpop.xlane.xlu0 %574 }
 0x696   : > { %v579_v27 = vmul.f32 %v1881_v14, %v575_v23  ;;  %879 = vadd.xlane.f32.xlu1 %v878_v24 }
 0x697   : > { %v1202_v9 = vrot.slane %v1186_v22, %v2318_v51  ;;  %v1188_v32 = vmul.f32 %v1186_v22, %v1186_v22 }
 0x698   : > { %v581_v1 = vsub.f32 %v579_v27, %v580_v26 }
 0x699   : > { %1631 = vst.msk [vmem:[%s2325_s19 + $0x4] sm:$0x1] %vm598_vm12, %v1202_v9  ;;  %v1183_v28 = vpop.xlane.xlu0 %1182 }
 0x69a   : > { %v582_v30 = vmax.f32 %v581_v1, 1e-12  ;;  %v1187_v31 = vmul.f32 %v1883_v21, %v1183_v28  ;;  %1481 = vadd.xlane.f32.xlu1 %v1480_v29 }
 0x69c   : > { %1884 = vrsqrt.f32 %v582_v30  ;;  %v1189_v33 = vsub.f32 %v1187_v31, %v1188_v32  ;;  %vm585_vm13 = vcmp.eq.f32.partialorder %v582_v30, inf  ;;  %v588_v39 = vand.u32 2147483648, %v582_v30 }
 0x69d   : > { %vm587_vm14 = vcmp.eq.f32.partialorder %v582_v30, 0.0 }
 0x69e   : > { %1485 = vadd.xlane.f32.xlu1 %v1484_v34  ;;  %v1190_v35 = vmax.f32 %v1189_v33, 1e-12 }
 0x6a0   : > { %1886 = vrsqrt.f32 %v1190_v35  ;;  %vm1193_vm15 = vcmp.eq.f32.partialorder %v1190_v35, inf  ;;  %v1196_v46 = vand.u32 2147483648, %v1190_v35  ;;  %vm1195_vm0 = vcmp.eq.f32.partialorder %v1190_v35, 0.0 }
 0x6a1   : > { %1888 = vrcp.f32 %v2315_v6 }
 0x6a6   : > { %v1885_v36 = vpop.eup %1884 }
 0x6a7   : > { %v584_v38 = vmul.f32 %v1885_v36, %v582_v30 }
 0x6a9   : > { %v586_v42 = vsel %vm585_vm13, %v582_v30, %v584_v38 }
 0x6aa   : > { %v589_v57 = vsel %vm587_vm14, %v588_v39, %v586_v42  ;;  %v1887_v43 = vpop.eup %1886 }
 0x6ab   : > { %v604_v44 = vrot.slane %v589_v57, %v2318_v51  ;;  %v1192_v45 = vmul.f32 %v1887_v43, %v1190_v35  ;;  %v1889_v12 = vpop.eup %1888 }
 0x6ad   : > { %606 = vst.msk [vmem:[%s2325_s19 + $0x1] sm:$0x1] %vm598_vm12, %v604_v44  ;;  %v1194_v47 = vsel %vm1193_vm15, %v1190_v35, %v1192_v45 }
 0x6ae   : > { %v1197_v48 = vsel %vm1195_vm0, %v1196_v46, %v1194_v47 }
 0x6af   : > { %v1210_v52 = vrot.slane %v1197_v48, %v2318_v51 }
 0x6b1   : > { %1632 = vst.msk [vmem:[%s2325_s19 + $0x5] sm:$0x1] %vm598_vm12, %v1210_v52 }
 0x71b   : > { %v1478_v53 = vpop.xlane.xlu1 %1477 }
 0x71c   : > { %1890 = vrcp.f32 %v1478_v53 }
 0x71f   : > { %v876_v54 = vpop.xlane.xlu1 %875 }
 0x720   : > { %v883_v55 = vmul.f32 %v1889_v12, %v876_v54 }
 0x722   : > { %v899_v56 = vrot.slane %v883_v55, %v2318_v51  ;;  %v885_v59 = vmul.f32 %v883_v55, %v883_v55 }
 0x723   : > { %v880_v58 = vpop.xlane.xlu1 %879 }
 0x724   : > { %1623 = vst.msk [vmem:[%s2325_s19 + $0x2] sm:$0x1] %vm598_vm12, %v899_v56  ;;  %v884_v60 = vmul.f32 %v1889_v12, %v880_v58 }
 0x726   : > { %v1891_v61 = vpop.eup %1890  ;;  %v886_v62 = vsub.f32 %v884_v60, %v885_v59 }
 0x727   : > { %v1482_v63 = vpop.xlane.xlu1 %1481 }
 0x728   : > { %v887_v2 = vmax.f32 %v886_v62, 1e-12  ;;  %v1489_v8 = vmul.f32 %v1891_v61, %v1482_v63 }
 0x72a   : > { %1892 = vrsqrt.f32 %v887_v2  ;;  %v1505_v49 = vrot.slane %v1489_v8, %v2318_v51  ;;  %v1491_v37 = vmul.f32 %v1489_v8, %v1489_v8  ;;  %vm890_vm1 = vcmp.eq.f32.partialorder %v887_v2, inf }
 0x72b   : > { %v1486_v3 = vpop.xlane.xlu1 %1485  ;;  %v893_v7 = vand.u32 2147483648, %v887_v2  ;;  %vm892_vm2 = vcmp.eq.f32.partialorder %v887_v2, 0.0 }
 0x72c   : > { %v1490_v4 = vmul.f32 %v1891_v61, %v1486_v3  ;;  %1639 = vst.msk [vmem:[%s2325_s19 + $0x6] sm:$0x1] %vm598_vm12, %v1505_v49 }
 0x72e   : > { %v1492_v50 = vsub.f32 %v1490_v4, %v1491_v37 }
 0x730   : > { %v1493_v5 = vmax.f32 %v1492_v50, 1e-12 }
 0x732   : > { %1894 = vrsqrt.f32 %v1493_v5  ;;  %vm1496_vm3 = vcmp.eq.f32.partialorder %v1493_v5, inf  ;;  %v1499_v17 = vand.u32 2147483648, %v1493_v5  ;;  %vm1498_vm4 = vcmp.eq.f32.partialorder %v1493_v5, 0.0 }
 0x734   : > { %v1893_v6 = vpop.eup %1892 }
 0x735   : > { %v889_v0 = vmul.f32 %v1893_v6, %v887_v2 }
 0x737   : > { %v891_v11 = vsel %vm890_vm1, %v887_v2, %v889_v0 }
 0x738   : > { %v894_v13 = vsel %vm892_vm2, %v893_v7, %v891_v11 }
 0x739   : > { %v907_v14 = vrot.slane %v894_v13, %v2318_v51 }
 0x73b   : > { %1624 = vst.msk [vmem:[%s2325_s19 + $0x3] sm:$0x1] %vm598_vm12, %v907_v14 }
 0x73c   : > { %v1895_v15 = vpop.eup %1894 }
 0x73d   : > { %v1495_v16 = vmul.f32 %v1895_v15, %v1493_v5 }
 0x73f   : > { %v1497_v18 = vsel %vm1496_vm3, %v1493_v5, %v1495_v16 }
 0x740   : > { %v1500_v19 = vsel %vm1498_vm4, %v1499_v17, %v1497_v18 }
 0x741   : > { %v1513_v20 = vrot.slane %v1500_v19, %v2318_v51 }
 0x743   : > { %1640 = vst.msk [vmem:[%s2325_s19 + $0x7] sm:$0x1] %vm598_vm12, %v1513_v20 }
 0x744   : > { %1939 = shalt.err (!%p1936_p2)
}
 0x745   : > { %s1940_s8 = scalar_lea.hbm %s2358_s17, 128  ;;  %s1944_s18 = scalar_lea.hbm %s2413_s6, 256 }
 0x746   : > { %p1941_p4 = scmp.ne.s32.totalorder %s2358_s17, %s1940_s8  ;;  %p1945_p9 = scmp.lt.u32.totalorder %s2358_s17, %s2413_s6 }
 0x747   : > { %p1946_p1 = scmp.lt.u32.totalorder %s1944_s18, %s1940_s8  ;;  %p1948_p6 = scmp.lt.u32.totalorder %s1940_s8, %s2358_s17 }
 0x748   : > { %p1942_p5 = pnand %p1941_p4, %p2420_p11 }
 0x749   : > { %p1947_p3 = por %p1946_p1, %p1945_p9 }
 0x74a   : > { %p1943_p7 = pneg %p1942_p5 }
 0x74b   : > { %p1949_p12 = por %p1948_p6, %p1947_p3 }
 0x74d   : > { %p1950_p13 = pnand %p1949_p12, %p1943_p7 }
 0x74f   : > { %1953 = shalt.err (!%p1950_p13)
}
 0x750   : > { %s2002_s14 = smov 32   ;;  %s2003_s15 = smov 2  }
 0x751   : > { %1794 = dma.vmem_to_hbm [thread:$0]  (%p2420_p11), %s2360_s11, 128, %s2358_s17, %s1517_s25, %s2002_s14, %s2002_s14, %s2003_s15  }
 0x752 PF: > { %s1545_s26 = sand.u32 1, %s1980_s21   ;;  %p2421_p8 = scmp.ne.s32.totalorder %s2418_s10, 0 }
 0x753   : > { %p2422_p10 = scmp.ge.s32.totalorder %s1992_s24, 2  ;;  %s1546_s28 = scalar_lea.sflag [#allocation4], %s1545_s26 }
 0x755   : > { %p1801_p0 = pnand %p2422_p10, %p2421_p8 }
 0x757   : > { %1975 = dma.done.wait (!%p1801_p0), %s1546_s28, 128  }
 0x758   : > { %1977 = vsyncadd (!%p1801_p0), %s1546_s28, 4294967168  ;;  %p19_p2 = scmp.ge.s32.totalorder %s2064_s27, 4   ;;  %s2423_s21 = smov %s1984_s22 }
 0x759   : > { %s2424_s22 = smov %s1988_s23  ;;  %s2425_s23 = smov %s2076_s30 }
 0x75a   : > { %s2426_s24 = smov %s2064_s27  ;;  %21 = sbr.rel (!%p19_p2) target bundleno = 5 (0x5), region = 95 }
 0x761   :  { %1551 = vsyncpa [#allocation3], 1 }
 0x762   :  { %1553 = vsyncpa [#allocation3 + $0x1], 1 }
 0x763   :  { %1554 = vsyncpa [#allocation4], 1 }
 0x764   :  { %1556 = vsyncpa [#allocation4 + $0x1], 1 }

</bundles_post_ra>
